<compile_context>
chip_gen: v7x
topology: tpu7x:2x2x1
jax: 0.10.0
libtpu: 0.0.40
codegen_flags: <defaults>
</compile_context>

<pallas_src>
import functools
import math

import jax
import jax.numpy as jnp
from jax.experimental import pallas as pl
from jax.experimental.pallas import tpu as pltpu


# ----------------------------------------------------------------- helpers ---

def _round_up(v, mult):
    return (v + mult - 1) // mult * mult


def _cdiv(a, b):
    return (a + b - 1) // b


def _vmem_capacity_bytes():
    """Per-core VMEM capacity (v5e/v6e: 128 MiB, v7x: 64 MiB), with fallback."""
    try:
        info = pltpu.get_tpu_info()
        cap = int(getattr(info, "vmem_capacity_bytes", 0))
        if cap > 0:
            return cap
    except Exception:
        pass
    return 64 * 1024 * 1024  # conservative fallback (v7x per-core VMEM)


# ------------------------------------------------------------------ kernel ---

def _arcsoftmax_kernel(x_ref, w_ref, o_ref, *, s, cos_m, sin_m, n_cls,
                       mask_classes):
    # x_ref: (tm, Fp) f32 ; w_ref: (Fp, Cp) pre-normalized (f32 or bf16).
    x = x_ref[...]

    # F.normalize(x, dim=1); rsqrt lands on the EUP slot (eps matches torch).
    x_n = x * jax.lax.rsqrt(
        jnp.maximum(jnp.sum(x * x, axis=1, keepdims=True), 1e-24))

    # MXU matmul in the weight's storage dtype, f32 accumulation.
    d = jnp.dot(x_n.astype(w_ref.dtype), w_ref[...],
                preferred_element_type=jnp.float32)        # == 10 * cosa

    # cosa = d/10 ; z = s*10*cosa = s*d
    # zm = s*10*cos(acos(cosa)+m) = (s*cos m)*d - (10*s*sin m)*sqrt(1-0.01*d^2)
    z = s * d
    zm = (s * cos_m) * d - (10.0 * s * sin_m) * jnp.sqrt(
        jnp.maximum(1.0 - 0.01 * (d * d), 0.0))

    # Single fused row-max for stabilization (cancels exactly in the ratio).
    zmax = jnp.maximum(z, zm)
    if mask_classes:  # compile-time branch: only when C % 128 != 0
        lane = jax.lax.broadcasted_iota(jnp.int32, z.shape, 1)
        valid = lane < n_cls
        zmax = jnp.where(valid, zmax, jnp.float32(-1e30))
    mx = jnp.max(zmax, axis=1, keepdims=True)

    e = jnp.exp(z - mx)
    if mask_classes:
        e = jnp.where(valid, e, 0.0)       # padded lanes out of the row sum
    em = jnp.exp(zm - mx)

    denom = jnp.sum(e, axis=1, keepdims=True) - e + em
    o_ref[...] = (em * pl.reciprocal(denom, approx=True)).astype(o_ref.dtype)


# ---------------------------------------------------------- weight prepare ---

def prepare_weight(w, *, matmul_dtype=None):
    """F.normalize(w, dim=0), pad to (128k, 128k) and cast — do this ONCE.

    w is a parameter: call once per weight update and reuse the result across
    forward passes (avoids re-normalizing / re-padding / re-reading w).
    Returns (prepared_weight, num_classes).
    """
    F, C = w.shape
    if matmul_dtype is None:
        # bf16 operands only pay off when the contraction is MXU-bound; for
        # small F the kernel is EUP/HBM-bound and f32 keeps the exponent exact.
        matmul_dtype = jnp.bfloat16 if F >= 256 else jnp.float32
    w32 = w.astype(jnp.float32)
    w_n = w32 * jax.lax.rsqrt(
        jnp.maximum(jnp.sum(w32 * w32, axis=0, keepdims=True), 1e-24))
    Fp, Cp = _round_up(F, 128), _round_up(C, 128)
    if (Fp, Cp) != (F, C):
        w_n = jnp.zeros((Fp, Cp), jnp.float32).at[:F, :C].set(w_n)
    return w_n.astype(matmul_dtype), C


# ----------------------------------------------------------------- wrapper ---

def arcsoftmax_prepared(x, w_prep, n_cls, s, m, *, tile_m=512, out_dtype=None):
    """Fused Arcsoftmax forward with a pre-prepared weight.  x:(N,F)->(N,C)."""
    N, F = x.shape
    Fp, Cp = w_prep.shape
    assert F <= Fp and n_cls <= Cp, (F, Fp, n_cls, Cp)

    out_dtype = jnp.dtype(out_dtype) if out_dtype is not None else jnp.dtype(x.dtype)
    row_align = max(8, 32 // out_dtype.itemsize)     # 8 for f32, 16 for bf16

    x_bytes = 4                                      # x tile kept f32 in VMEM
    w_bytes = jnp.dtype(w_prep.dtype).itemsize
    o_bytes = out_dtype.itemsize

    # --- generation-aware tile sizing from actual block footprints ----------
    vmem_cap = _vmem_capacity_bytes()
    budget = int(0.70 * vmem_cap)                    # leave compiler headroom
    w_cost = 2 * Fp * Cp * w_bytes                   # weight block (2 buffers)
    per_row = 2 * (Fp * x_bytes + Cp * o_bytes)      # x + out tiles, 2 buffers
    tm_budget = max(row_align,
                    ((budget - w_cost) // per_row) // row_align * row_align)

    Np0 = _round_up(max(N, row_align), row_align)
    tm_target = max(row_align,
                    min(_round_up(tile_m, row_align), tm_budget, Np0))
    # Balanced tiling (minimal tail padding) + keep both megacore TCs busy.
    min_tiles = 2 if Np0 >= 2 * row_align else 1
    n_tiles = max(_cdiv(Np0, tm_target), min_tiles)
    tm = _round_up(_cdiv(Np0, n_tiles), row_align)
    n_tiles = _cdiv(Np0, tm)
    Np = n_tiles * tm

    # --- pad x only when needed ---------------------------------------------
    x32 = x.astype(jnp.float32)
    if (Np, Fp) != (N, F):
        xp = jnp.zeros((Np, Fp), jnp.float32).at[:N, :F].set(x32)
    else:
        xp = x32

    mask_classes = (n_cls != Cp)
    kernel = functools.partial(
        _arcsoftmax_kernel,
        s=float(s), cos_m=math.cos(float(m)), sin_m=math.sin(float(m)),
        n_cls=int(n_cls), mask_classes=mask_classes)

    need = w_cost + 2 * tm * (Fp * x_bytes + Cp * o_bytes)
    vmem_limit = int(min(max(need + (8 << 20), 32 << 20), int(0.9 * vmem_cap)))

    out = pl.pallas_call(
        kernel,
        out_shape=jax.ShapeDtypeStruct((Np, Cp), out_dtype),
        grid_spec=pltpu.PrefetchScalarGridSpec(
            num_scalar_prefetch=0,
            grid=(n_tiles,),
            in_specs=[
                pl.BlockSpec((tm, Fp), lambda i: (i, 0)),
                # Constant block index: weight tile stays VMEM-resident across
                # every grid step (no re-DMA).
                pl.BlockSpec((Fp, Cp), lambda i: (0, 0)),
            ],
            out_specs=pl.BlockSpec((tm, Cp), lambda i: (i, 0)),
        ),
        compiler_params=pltpu.CompilerParams(
            dimension_semantics=("parallel",),
            vmem_limit_bytes=vmem_limit,
        ),
        cost_estimate=pl.CostEstimate(
            flops=2 * Np * Fp * Cp + 10 * Np * Cp + 3 * Np * Fp,
            transcendentals=4 * Np * Cp,
            bytes_accessed=x_bytes * Np * Fp + w_bytes * Fp * Cp
            + o_bytes * Np * Cp,
        ),
    )(xp, w_prep)

    return out[:N, :n_cls]


def arcsoftmax(x, w, s, m, *, tile_m=512, out_dtype=None, matmul_dtype=None):
    """Convenience wrapper: prepare the weight inline, then run the kernel."""
    w_prep, n_cls = prepare_weight(w, matmul_dtype=matmul_dtype)
    return arcsoftmax_prepared(x, w_prep, n_cls, s, m,
                               tile_m=tile_m, out_dtype=out_dtype)


# ----------------------------------------------------- pure-JAX reference ---

def _arcsoftmax_ref(x, w, s, m):
    x_n = x / jnp.maximum(jnp.linalg.norm(x, axis=1, keepdims=True), 1e-12)
    w_n = w / jnp.maximum(jnp.linalg.norm(w, axis=0, keepdims=True), 1e-12)
    cosa = (x_n @ w_n) / 10.0
    a = jnp.arccos(cosa)
    e_m = jnp.exp(s * jnp.cos(a + m) * 10.0)
    e = jnp.exp(s * cosa * 10.0)
    return e_m / (jnp.sum(e, axis=1, keepdims=True) - e + e_m)


# -------------------------------------------------------------------- main ---

if __name__ == "__main__":
    key = jax.random.PRNGKey(0)
    kx, kw = jax.random.split(key)

    # Matches the TrainNet usage Arcsoftmax(feature_num=2, cls_num=10), batch=2.
    N, F, C = 2, 2, 10
    x = jax.random.normal(kx, (N, F), jnp.float32)
    w = jax.random.normal(kw, (F, C), jnp.float32)
    s, m = 1.0, 0.5

    fwd = jax.jit(lambda xx, ww: arcsoftmax(xx, ww, s, m))
    out = fwd(x, w)
    jax.block_until_ready(out)

    ref = _arcsoftmax_ref(x, w, s, m)
    assert out.shape == (N, C)
    assert bool(jnp.all(jnp.isfinite(out)))
    assert bool(jnp.allclose(out, ref, rtol=1e-2, atol=1e-4)), (
        float(jnp.max(jnp.abs(out - ref))))
    print("KERNEL_OK")
</pallas_src>

<mosaic_0001>
module attributes {stable_mosaic.version = 11 : i64} {
  func.func @_arcsoftmax_kernel(%arg0: i32, %arg1: memref<8x128xf32, #tpu.memory_space<vmem>>, %arg2: memref<128x128xf32, #tpu.memory_space<vmem>>, %arg3: memref<8x128xf32, #tpu.memory_space<vmem>>) attributes {dimension_semantics = [#tpu.dimension_semantics<parallel>], iteration_bounds = array<i64: 1>, scalar_prefetch = 0 : i64, scratch_operands = 0 : i64, tpu.core_type = #tpu.core_type<tc>, window_params = [{transform_indices = @transform_0, window_bounds = array<i64: 8, 128>}, {pipeline_mode = #tpu.pipeline_mode<synchronous>, transform_indices = @transform_1, window_bounds = array<i64: 128, 128>}, {transform_indices = @transform_2, window_bounds = array<i64: 8, 128>}]} {
    %c0 = arith.constant 0 : index
    %c0_0 = arith.constant 0 : index
    %0 = vector.load %arg1[%c0, %c0_0] : memref<8x128xf32, #tpu.memory_space<vmem>>, vector<8x128xf32>
    %1 = arith.mulf %0, %0 : vector<8x128xf32>
    %cst = arith.constant dense<0.000000e+00> : vector<8xf32>
    %2 = vector.multi_reduction <add>, %1, %cst [1] : vector<8x128xf32> to vector<8xf32>
    %3 = vector.shape_cast %2 : vector<8xf32> to vector<8x1xf32>
    %cst_1 = arith.constant 1.000000e-24 : f32
    %4 = vector.broadcast %cst_1 : f32 to vector<8x1xf32>
    %5 = arith.maximumf %3, %4 : vector<8x1xf32>
    %6 = math.rsqrt %5 : vector<8x1xf32>
    %7 = vector.broadcast %6 : vector<8x1xf32> to vector<8x128xf32>
    %8 = arith.mulf %0, %7 : vector<8x128xf32>
    %c0_2 = arith.constant 0 : index
    %c0_3 = arith.constant 0 : index
    %9 = vector.load %arg2[%c0_2, %c0_3] : memref<128x128xf32, #tpu.memory_space<vmem>>, vector<128x128xf32>
    %cst_4 = arith.constant dense<0.000000e+00> : vector<8x128xf32>
    %10 = tpu.matmul %8, %9, %cst_4 {dimension_numbers = #tpu.dot_dimension_numbers<[1], [0], [0], [1], [0, 0, 1, 1], [], []>} : vector<8x128xf32>, vector<128x128xf32>, vector<8x128xf32> -> vector<8x128xf32>
    %cst_5 = arith.constant 1.000000e+00 : f32
    %11 = vector.broadcast %cst_5 : f32 to vector<8x128xf32>
    %12 = arith.mulf %11, %10 : vector<8x128xf32>
    %cst_6 = arith.constant 0.87758255 : f32
    %13 = vector.broadcast %cst_6 : f32 to vector<8x128xf32>
    %14 = arith.mulf %13, %10 : vector<8x128xf32>
    %15 = arith.mulf %10, %10 : vector<8x128xf32>
    %cst_7 = arith.constant 0.00999999977 : f32
    %16 = vector.broadcast %cst_7 : f32 to vector<8x128xf32>
    %17 = arith.mulf %16, %15 : vector<8x128xf32>
    %cst_8 = arith.constant 1.000000e+00 : f32
    %18 = vector.broadcast %cst_8 : f32 to vector<8x128xf32>
    %19 = arith.subf %18, %17 : vector<8x128xf32>
    %cst_9 = arith.constant 0.000000e+00 : f32
    %20 = vector.broadcast %cst_9 : f32 to vector<8x128xf32>
    %21 = arith.maximumf %19, %20 : vector<8x128xf32>
    %22 = math.sqrt %21 : vector<8x128xf32>
    %cst_10 = arith.constant 4.79425526 : f32
    %23 = vector.broadcast %cst_10 : f32 to vector<8x128xf32>
    %24 = arith.mulf %23, %22 : vector<8x128xf32>
    %25 = arith.subf %14, %24 : vector<8x128xf32>
    %26 = arith.maximumf %12, %25 : vector<8x128xf32>
    %27 = tpu.iota {dimensions = array<i32: 1>} : vector<8x128xi32>
    %c10_i32 = arith.constant 10 : i32
    %28 = vector.broadcast %c10_i32 : i32 to vector<8x128xi32>
    %29 = arith.cmpi slt, %27, %28 : vector<8x128xi32>
    %cst_11 = arith.constant -1.000000e+30 : f32
    %30 = vector.broadcast %cst_11 : f32 to vector<8x128xf32>
    %31 = arith.select %29, %26, %30 : vector<8x128xi1>, vector<8x128xf32>
    %cst_12 = arith.constant dense<0xFF800000> : vector<8xf32>
    %32 = vector.multi_reduction <maximumf>, %31, %cst_12 [1] : vector<8x128xf32> to vector<8xf32>
    %33 = vector.shape_cast %32 : vector<8xf32> to vector<8x1xf32>
    %34 = vector.broadcast %33 : vector<8x1xf32> to vector<8x128xf32>
    %35 = arith.subf %12, %34 : vector<8x128xf32>
    %36 = math.exp %35 : vector<8x128xf32>
    %cst_13 = arith.constant 0.000000e+00 : f32
    %37 = vector.broadcast %cst_13 : f32 to vector<8x128xf32>
    %38 = arith.select %29, %36, %37 : vector<8x128xi1>, vector<8x128xf32>
    %39 = vector.broadcast %33 : vector<8x1xf32> to vector<8x128xf32>
    %40 = arith.subf %25, %39 : vector<8x128xf32>
    %41 = math.exp %40 : vector<8x128xf32>
    %cst_14 = arith.constant dense<0.000000e+00> : vector<8xf32>
    %42 = vector.multi_reduction <add>, %38, %cst_14 [1] : vector<8x128xf32> to vector<8xf32>
    %43 = vector.shape_cast %42 : vector<8xf32> to vector<8x1xf32>
    %44 = vector.broadcast %43 : vector<8x1xf32> to vector<8x128xf32>
    %45 = arith.subf %44, %38 : vector<8x128xf32>
    %46 = arith.addf %45, %41 : vector<8x128xf32>
    %47 = tpu.reciprocal %46 {approx = true} : vector<8x128xf32> -> vector<8x128xf32>
    %48 = arith.mulf %41, %47 : vector<8x128xf32>
    %c0_15 = arith.constant 0 : index
    %c0_16 = arith.constant 0 : index
    %49 = vector.load %arg3[%c0_15, %c0_16] : memref<8x128xf32, #tpu.memory_space<vmem>>, vector<8x128xf32>
    tpu.vector_store %arg3[%c0_15, %c0_16], %48 {strides = array<i32>} : memref<8x128xf32, #tpu.memory_space<vmem>>, vector<8x128xf32>,
    return
  }
  func.func @transform_0(%arg0: i32) -> (i32, i32) {
    %c0_i32 = arith.constant 0 : i32
    %c0_i32_0 = arith.constant 0 : i32
    return %arg0, %c0_i32 : i32, i32
  }
  func.func @transform_1(%arg0: i32) -> (i32, i32) {
    %c0_i32 = arith.constant 0 : i32
    %c0_i32_0 = arith.constant 0 : i32
    %c0_i32_1 = arith.constant 0 : i32
    return %c0_i32, %c0_i32_0 : i32, i32
  }
  func.func @transform_2(%arg0: i32) -> (i32, i32) {
    %c0_i32 = arith.constant 0 : i32
    %c0_i32_0 = arith.constant 0 : i32
    return %arg0, %c0_i32 : i32, i32
  }
}

</mosaic_0001>

<bundles_post_ra>
// kernel: _lambda_.1
= control target key start
LH: loop header
LB: loop body
LE: loop exit
PB: predicated region body
PF: predicated region fallthrough
CT: control target
= control target key end

     0   :  { %v232_v1 = vmov 0.0|0.0   ;;  %vm233_vm0 = vmmov 0   ;;  %v234_v23 = vmov 0.0   ;;  %v119_v39 = vlaneseq  ;;  %s304_s0 = inlined_call_operand.vmem [shape: f32[8,128], index: 0, kind: input, shape index: {}]   ;;  %s305_s1 = inlined_call_operand.vmem [shape: f32[128,128], index: 1, kind: input, shape index: {}]   ;;  %s306_s2 = inlined_call_operand.vmem [shape: f32[8,128], index: 2, kind: output, shape index: {}]  }
   0x1   :  { %v11_v0 = vld [vmem:[%s304_s0] sm:$0xff]  ;;  %195 = vmatprep.subr.bf16.mxu0 %v232_v1  ;;  %v19_v3 = vld [vmem:[%s305_s1 + $0x8] sm:$0xff]  ;;  %v20_v6 = vld [vmem:[%s305_s1 + $0x10] sm:$0xff]  ;;  %192 = vmatprep.mubr.msk.f32.mxu0 %vm233_vm0, %v234_v23 }
   0x2   :  { %v18_v2 = vld [vmem:[%s305_s1] sm:$0xff]  ;;  %v12_v4 = vmul.f32 %v11_v0, %v11_v0  ;;  %v21_v7 = vld [vmem:[%s305_s1 + $0x18] sm:$0xff]  ;;  %v23_v10 = vld [vmem:[%s305_s1 + $0x28] sm:$0xff]  ;;  %v120_v44 = vand.u32 127, %v119_v39 }
   0x3   :  { %v196_v5 = vpack.c.bf16 %v19_v3, %v18_v2  ;;  %v199_v8 = vpack.c.bf16 %v21_v7, %v20_v6  ;;  %v22_v9 = vld [vmem:[%s305_s1 + $0x20] sm:$0xff]  ;;  %v24_v12 = vld [vmem:[%s305_s1 + $0x30] sm:$0xff]  ;;  %v25_v13 = vld [vmem:[%s305_s1 + $0x38] sm:$0xff] }
   0x4   :  { %13 = vadd.xlane.f32.xlu0 %v12_v4  ;;  %v202_v11 = vpack.c.bf16 %v23_v10, %v22_v9  ;;  %v205_v14 = vpack.c.bf16 %v25_v13, %v24_v12  ;;  %v26_v15 = vld [vmem:[%s305_s1 + $0x40] sm:$0xff]  ;;  %v27_v16 = vld [vmem:[%s305_s1 + $0x48] sm:$0xff]  ;;  %v28_v18 = vld [vmem:[%s305_s1 + $0x50] sm:$0xff]  ;;  %vm121_vm3 = vcmp.lt.s32.totalorder %v120_v44, 10 }
   0x5   :  { %197 = vmatpush3.bf16.msra.mxu0 %v196_v5  ;;  %v208_v17 = vpack.c.bf16 %v27_v16, %v26_v15  ;;  %v29_v19 = vld [vmem:[%s305_s1 + $0x58] sm:$0xff]  ;;  %v30_v21 = vld [vmem:[%s305_s1 + $0x60] sm:$0xff]  ;;  %v31_v22 = vld [vmem:[%s305_s1 + $0x68] sm:$0xff] }
   0x6   :  { %198 = vmatprep.subr.bf16.mxu0 %v232_v1  ;;  %v211_v20 = vpack.c.bf16 %v29_v19, %v28_v18  ;;  %v214_v24 = vpack.c.bf16 %v31_v22, %v30_v21  ;;  %v32_v25 = vld [vmem:[%s305_s1 + $0x70] sm:$0xff]  ;;  %v33_v26 = vld [vmem:[%s305_s1 + $0x78] sm:$0xff] }
   0x7   :  { %v217_v27 = vpack.c.bf16 %v33_v26, %v32_v25 }
   0x9   :  { %200 = vmatpush3.bf16.msra.mxu0 %v199_v8 }
   0xa   :  { %201 = vmatprep.subr.bf16.mxu0 %v232_v1 }
   0xd   :  { %203 = vmatpush3.bf16.msra.mxu0 %v202_v11 }
   0xe   :  { %204 = vmatprep.subr.bf16.mxu0 %v232_v1 }
  0x11   :  { %206 = vmatpush3.bf16.msra.mxu0 %v205_v14 }
  0x12   :  { %207 = vmatprep.subr.bf16.mxu0 %v232_v1 }
  0x15   :  { %209 = vmatpush3.bf16.msra.mxu0 %v208_v17 }
  0x16   :  { %210 = vmatprep.subr.bf16.mxu0 %v232_v1 }
  0x19   :  { %212 = vmatpush3.bf16.msra.mxu0 %v211_v20 }
  0x1a   :  { %213 = vmatprep.subr.bf16.mxu0 %v232_v1 }
  0x1d   :  { %215 = vmatpush3.bf16.msra.mxu0 %v214_v24 }
  0x1e   :  { %216 = vmatprep.subr.bf16.mxu0 %v232_v1 }
  0x21   :  { %218 = vmatpush3.bf16.msra.mxu0 %v217_v27 }
  0x91   :  { %v14_v28 = vpop.xlane.xlu0 %13 }
  0x92   :  { %v15_v29 = vmax.f32 %v14_v28, 1e-24 }
  0x94   :  { %222 = vrsqrt.f32 %v15_v29 }
  0x9e   :  { %v223_v30 = vpop.eup %222 }
  0x9f   :  { %v17_v31 = vmul.f32 %v223_v30, %v11_v0 }
  0xa1   :  { %193 = vmatmul.mubr.f32.vlgmr.msra.gmra.mrb[0].mxu0 %v17_v31 }
 0x174   :  { %v100_v32 = vpop.f32.mrb[0].mxu0 }
 0x175   :  { %v105_v33 = vmul.f32 %v100_v32, %v100_v32  ;;  %v194_v34 = vpop.f32.mrb[1].mxu0  ;;  %v104_v45 = vmul.f32 0.87758255, %v100_v32 }
 0x177   :  { %v106_v35 = vmul.f32 0.01, %v105_v33 }
 0x179   :  { %v107_v36 = vsub.f32 1.0, %v106_v35 }
 0x17b   :  { %v108_v37 = vmax.f32 %v107_v36, 0.0 }
 0x17d   :  { %224 = vrsqrt.f32 %v108_v37  ;;  %vm111_vm1 = vcmp.eq.f32.partialorder %v108_v37, inf  ;;  %v114_v41 = vand.u32 2147483648, %v108_v37  ;;  %vm113_vm2 = vcmp.eq.f32.partialorder %v108_v37, 0.0 }
 0x187   :  { %v225_v38 = vpop.eup %224 }
 0x188   :  { %v110_v40 = vmul.f32 %v225_v38, %v108_v37 }
 0x18a   :  { %v112_v42 = vsel %vm111_vm1, %v108_v37, %v110_v40 }
 0x18b   :  { %v115_v43 = vsel %vm113_vm2, %v114_v41, %v112_v42 }
 0x18c   :  { %v116_v46 = vmul.f32 4.7942553, %v115_v43 }
 0x18e   :  { %v117_v47 = vsub.f32 %v104_v45, %v116_v46 }
 0x190   :  { %v118_v48 = vmax.f32 %v100_v32, %v117_v47 }
 0x192   :  { %v122_v49 = vsel %vm121_vm3, %v118_v48, -1e+30 }
 0x193   :  { %123 = vmax.xlane.f32.xlu0 %v122_v49 }
 0x220   :  { %v124_v50 = vpop.xlane.xlu0 %123 }
 0x221   :  { %v125_v51 = vsub.f32 %v100_v32, %v124_v50  ;;  %v129_v55 = vsub.f32 %v117_v47, %v124_v50 }
 0x223   :  { %v126_v52 = vmul.f32 1.442695, %v125_v51  ;;  %v130_v56 = vmul.f32 1.442695, %v129_v55 }
 0x225   :  { %226 = vpow2.f32 %v126_v52 }
 0x226   :  { %228 = vpow2.f32 %v130_v56 }
 0x22f   :  { %v227_v53 = vpop.eup %226 }
 0x230   :  { %v128_v54 = vsel %vm121_vm3, %v227_v53, 0.0  ;;  %v229_v59 = vpop.eup %228 }
 0x231   :  { %132 = vadd.xlane.f32.xlu1 %v128_v54 }
 0x2be   :  { %v133_v57 = vpop.xlane.xlu1 %132 }
 0x2bf   :  { %v134_v58 = vsub.f32 %v133_v57, %v128_v54 }
 0x2c1   :  { %v135_v60 = vadd.f32 %v229_v59, %v134_v58 }
 0x2c3   :  { %230 = vrcp.f32 %v135_v60 }
 0x2cd   :  { %v231_v61 = vpop.eup %230 }
 0x2ce   :  { %v137_v62 = vmul.f32 %v231_v61, %v229_v59 }
 0x2d0   :  { %138 = vst [vmem:[%s306_s2] sm:$0xff] %v137_v62 }

</bundles_post_ra>
